<compile_context>
chip_gen: v6e
topology: v6e:2x2x1
jax: 0.10.0
libtpu: 0.0.40
codegen_flags: <defaults>
</compile_context>

<pallas_src>
import functools

import jax
import jax.numpy as jnp
from jax.experimental import pallas as pl
from jax.experimental.pallas import tpu as pltpu

_IN_FEATURES = 68     # fc1 input width
_LANES = 128          # padded feature width for every layer (MXU-native)
_OUT_LANES = 8        # narrow output slab; classes live in lanes 0..2
_NEG_INF = -1e30      # bakes the 3-class mask into the fc4 bias padding


def _mlp_kernel(x_ref, w_ref, b_ref, o_ref, xpad_ref):
    """x_ref: (tb,68) f32; w_ref: (4,128,128) bf16; b_ref: (4,128) f32;
    o_ref: (tb,8) f32; xpad_ref: (tb,128) bf16 VMEM scratch."""
    # In-kernel bf16 cast + lane-pad 68 -> 128 (no wrapper-side x_pad pass over HBM).
    xpad_ref[...] = jnp.zeros_like(xpad_ref)
    xpad_ref[:, :_IN_FEATURES] = x_ref[...].astype(jnp.bfloat16)

    b = b_ref[...]            # (4,128) f32, tiny, load once
    h = xpad_ref[...]         # bf16 activations, f32 accumulation on the MXU
    # fc1..fc3 + ReLU.
    # TODO(synk): nn.Dropout(0.2) is identity in eval mode; training-mode RNG mask not implemented.
    for l in range(3):
        h = jnp.dot(h, w_ref[l], preferred_element_type=jnp.float32) + b[l:l + 1, :]
        h = jnp.maximum(h, 0.0).astype(jnp.bfloat16)
    # fc4: padded bias lanes hold -1e30 (f32), so padded logits drop out of the softmax below.
    logits = jnp.dot(h, w_ref[3], preferred_element_type=jnp.float32) + b[3:4, :]
    # Numerically stable softmax over the first 8 lanes (classes 0..2; lanes 3..7 masked).
    lg = logits[:, :_OUT_LANES]
    m = jnp.max(lg, axis=1, keepdims=True)
    e = jnp.exp(lg - m)
    s = jnp.sum(e, axis=1, keepdims=True)
    o_ref[...] = (e * pl.reciprocal(s, approx=False)).astype(o_ref.dtype)


def _round_up(n, m):
    return ((n + m - 1) // m) * m


def pack_params(params):
    """Pack the 4 Linear layers into MXU-friendly zero-padded 128-lane slabs (done once)."""
    dims = [(68, 128), (128, 64), (64, 32), (32, 3)]
    w = jnp.zeros((4, _LANES, _LANES), jnp.float32)
    b = jnp.zeros((4, _LANES), jnp.float32)
    for l, (fi, fo) in enumerate(dims):
        w = w.at[l, :fi, :fo].set(params[f"w{l + 1}"])
        b = b.at[l, :fo].set(params[f"b{l + 1}"].reshape(-1))
    # Softmax lane mask: padded class lanes of the fc4 bias -> -inf-ish so exp() gives exactly 0.
    # Mask stays in the f32 bias slab; never cast it to bf16.
    b = b.at[3, 3:].set(_NEG_INF)
    return w.astype(jnp.bfloat16), b


@functools.partial(jax.jit, static_argnames=("tile_b",))
def pose_classifier_forward(x, w_packed, b_packed, *, tile_b=2048):
    """x: (B, 68) float32. Returns (B, 3) float32 class probabilities."""
    B = x.shape[0]
    # Aim for >=2 grid steps (so v7x megacore splits the batch across both TensorCores) while
    # capping the tile so the double-buffered working set stays far below v7x's 64 MiB VMEM.
    tb = max(8, min(tile_b, _round_up((B + 1) // 2, 8)))
    grid = (pl.cdiv(B, tb),)   # no batch padding: partial last block handled by Pallas

    out = pl.pallas_call(
        _mlp_kernel,
        out_shape=jax.ShapeDtypeStruct((B, _OUT_LANES), jnp.float32),
        grid=grid,
        in_specs=[
            pl.BlockSpec((tb, _IN_FEATURES), lambda i: (i, 0)),      # x: tiled over batch, f32
            pl.BlockSpec((4, _LANES, _LANES), lambda i: (0, 0, 0)),  # weights: resident slab
            pl.BlockSpec((4, _LANES), lambda i: (0, 0)),             # biases: resident
        ],
        out_specs=pl.BlockSpec((tb, _OUT_LANES), lambda i: (i, 0)),  # narrow (tb,8) f32 writeback
        scratch_shapes=[pltpu.VMEM((tb, _LANES), jnp.bfloat16)],     # in-kernel lane-pad buffer
        compiler_params=pltpu.CompilerParams(
            dimension_semantics=("parallel",)),                      # megacore on v7x
    )(x, w_packed, b_packed)
    return out[:, :3]


def init_params(key):
    """Deterministic init mimicking torch.nn.Linear (uniform +/- 1/sqrt(fan_in))."""
    dims = [(68, 128), (128, 64), (64, 32), (32, 3)]
    params = {}
    for idx, (fan_in, fan_out) in enumerate(dims, start=1):
        key, kw, kb = jax.random.split(key, 3)
        bound = 1.0 / jnp.sqrt(jnp.float32(fan_in))
        params[f"w{idx}"] = jax.random.uniform(
            kw, (fan_in, fan_out), jnp.float32, -bound, bound)
        params[f"b{idx}"] = jax.random.uniform(
            kb, (1, fan_out), jnp.float32, -bound, bound)
    return params


def reference_forward(x, params):
    h = jnp.maximum(x @ params["w1"] + params["b1"], 0.0)
    h = jnp.maximum(h @ params["w2"] + params["b2"], 0.0)
    h = jnp.maximum(h @ params["w3"] + params["b3"], 0.0)
    logits = h @ params["w4"] + params["b4"]
    return jax.nn.softmax(logits, axis=1)


if __name__ == "__main__":
    key = jax.random.PRNGKey(0)
    key, kx = jax.random.split(key)
    params = init_params(key)
    w_packed, b_packed = pack_params(params)

    # B=8: single exact tile.  B=13: exercises the cdiv grid with a partial last tile.
    for B in (8, 13):
        x = jax.random.normal(jax.random.fold_in(kx, B), (B, _IN_FEATURES), jnp.float32)
        out = jax.block_until_ready(pose_classifier_forward(x, w_packed, b_packed))
        ref = reference_forward(x, params)
        assert out.shape == (B, 3)
        # bf16 storage/activations loosen numerics vs the f32 reference.
        assert jnp.allclose(out, ref, atol=2e-2, rtol=2e-2), (B, jnp.max(jnp.abs(out - ref)))
        assert jnp.allclose(jnp.sum(out, axis=1), 1.0, atol=1e-3)

    print("KERNEL_OK")
</pallas_src>

<mosaic_0001>
module attributes {stable_mosaic.version = 11 : i64} {
  func.func @_mlp_kernel(%arg0: i32, %arg1: memref<8x68xf32, #tpu.memory_space<vmem>>, %arg2: memref<4x128x128xbf16, #tpu.memory_space<vmem>>, %arg3: memref<4x128xf32, #tpu.memory_space<vmem>>, %arg4: memref<8x8xf32, #tpu.memory_space<vmem>>, %arg5: memref<8x128xbf16, #tpu.memory_space<vmem>>) attributes {dimension_semantics = [#tpu.dimension_semantics<parallel>], iteration_bounds = array<i64: 1>, scalar_prefetch = 0 : i64, scratch_operands = 1 : i64, tpu.core_type = #tpu.core_type<tc>, window_params = [{transform_indices = @transform_0, window_bounds = array<i64: 8, 68>}, {pipeline_mode = #tpu.pipeline_mode<synchronous>, transform_indices = @transform_1, window_bounds = array<i64: 4, 128, 128>}, {pipeline_mode = #tpu.pipeline_mode<synchronous>, transform_indices = @transform_2, window_bounds = array<i64: 4, 128>}, {transform_indices = @transform_3, window_bounds = array<i64: 8, 8>}]} {
    %cst = arith.constant 0.000000e+00 : bf16
    %0 = vector.broadcast %cst : bf16 to vector<8x128xbf16>
    %c0 = arith.constant 0 : index
    %c0_0 = arith.constant 0 : index
    %1 = vector.load %arg5[%c0, %c0_0] : memref<8x128xbf16, #tpu.memory_space<vmem>>, vector<8x128xbf16>
    tpu.vector_store %arg5[%c0, %c0_0], %0 {strides = array<i32>} : memref<8x128xbf16, #tpu.memory_space<vmem>>, vector<8x128xbf16>,
    %c0_1 = arith.constant 0 : index
    %c0_2 = arith.constant 0 : index
    %2 = vector.load %arg1[%c0_1, %c0_2] : memref<8x68xf32, #tpu.memory_space<vmem>>, vector<8x68xf32>
    %3 = arith.truncf %2 : vector<8x68xf32> to vector<8x68xbf16>
    %c0_3 = arith.constant 0 : index
    %c0_4 = arith.constant 0 : index
    %4 = vector.load %arg5[%c0_3, %c0_4] : memref<8x128xbf16, #tpu.memory_space<vmem>>, vector<8x68xbf16>
    tpu.vector_store %arg5[%c0_3, %c0_4], %3 {strides = array<i32>} : memref<8x128xbf16, #tpu.memory_space<vmem>>, vector<8x68xbf16>,
    %c0_5 = arith.constant 0 : index
    %c0_6 = arith.constant 0 : index
    %5 = vector.load %arg3[%c0_5, %c0_6] : memref<4x128xf32, #tpu.memory_space<vmem>>, vector<4x128xf32>
    %c0_7 = arith.constant 0 : index
    %c0_8 = arith.constant 0 : index
    %6 = vector.load %arg5[%c0_7, %c0_8] : memref<8x128xbf16, #tpu.memory_space<vmem>>, vector<8x128xbf16>
    %c0_9 = arith.constant 0 : index
    %c0_10 = arith.constant 0 : index
    %c0_11 = arith.constant 0 : index
    %7 = vector.load %arg2[%c0_9, %c0_10, %c0_11] : memref<4x128x128xbf16, #tpu.memory_space<vmem>>, vector<1x128x128xbf16>
    %8 = vector.shape_cast %7 : vector<1x128x128xbf16> to vector<128x128xbf16>
    %cst_12 = arith.constant dense<0.000000e+00> : vector<8x128xf32>
    %9 = tpu.matmul %6, %8, %cst_12 {dimension_numbers = #tpu.dot_dimension_numbers<[1], [0], [0], [1], [0, 0, 1, 1], [], []>} : vector<8x128xbf16>, vector<128x128xbf16>, vector<8x128xf32> -> vector<8x128xf32>
    %10 = vector.extract_strided_slice %5 {offsets = [0, 0], sizes = [1, 128], strides = [1, 1]} : vector<4x128xf32> to vector<1x128xf32>
    %11 = vector.broadcast %10 : vector<1x128xf32> to vector<8x128xf32>
    %12 = arith.addf %9, %11 : vector<8x128xf32>
    %cst_13 = arith.constant 0.000000e+00 : f32
    %13 = vector.broadcast %cst_13 : f32 to vector<8x128xf32>
    %14 = arith.maximumf %12, %13 : vector<8x128xf32>
    %15 = arith.truncf %14 : vector<8x128xf32> to vector<8x128xbf16>
    %c1 = arith.constant 1 : index
    %c0_14 = arith.constant 0 : index
    %c0_15 = arith.constant 0 : index
    %16 = vector.load %arg2[%c1, %c0_14, %c0_15] : memref<4x128x128xbf16, #tpu.memory_space<vmem>>, vector<1x128x128xbf16>
    %17 = vector.shape_cast %16 : vector<1x128x128xbf16> to vector<128x128xbf16>
    %cst_16 = arith.constant dense<0.000000e+00> : vector<8x128xf32>
    %18 = tpu.matmul %15, %17, %cst_16 {dimension_numbers = #tpu.dot_dimension_numbers<[1], [0], [0], [1], [0, 0, 1, 1], [], []>} : vector<8x128xbf16>, vector<128x128xbf16>, vector<8x128xf32> -> vector<8x128xf32>
    %19 = vector.extract_strided_slice %5 {offsets = [1, 0], sizes = [1, 128], strides = [1, 1]} : vector<4x128xf32> to vector<1x128xf32>
    %20 = vector.broadcast %19 : vector<1x128xf32> to vector<8x128xf32>
    %21 = arith.addf %18, %20 : vector<8x128xf32>
    %cst_17 = arith.constant 0.000000e+00 : f32
    %22 = vector.broadcast %cst_17 : f32 to vector<8x128xf32>
    %23 = arith.maximumf %21, %22 : vector<8x128xf32>
    %24 = arith.truncf %23 : vector<8x128xf32> to vector<8x128xbf16>
    %c2 = arith.constant 2 : index
    %c0_18 = arith.constant 0 : index
    %c0_19 = arith.constant 0 : index
    %25 = vector.load %arg2[%c2, %c0_18, %c0_19] : memref<4x128x128xbf16, #tpu.memory_space<vmem>>, vector<1x128x128xbf16>
    %26 = vector.shape_cast %25 : vector<1x128x128xbf16> to vector<128x128xbf16>
    %cst_20 = arith.constant dense<0.000000e+00> : vector<8x128xf32>
    %27 = tpu.matmul %24, %26, %cst_20 {dimension_numbers = #tpu.dot_dimension_numbers<[1], [0], [0], [1], [0, 0, 1, 1], [], []>} : vector<8x128xbf16>, vector<128x128xbf16>, vector<8x128xf32> -> vector<8x128xf32>
    %28 = vector.extract_strided_slice %5 {offsets = [2, 0], sizes = [1, 128], strides = [1, 1]} : vector<4x128xf32> to vector<1x128xf32>
    %29 = vector.broadcast %28 : vector<1x128xf32> to vector<8x128xf32>
    %30 = arith.addf %27, %29 : vector<8x128xf32>
    %cst_21 = arith.constant 0.000000e+00 : f32
    %31 = vector.broadcast %cst_21 : f32 to vector<8x128xf32>
    %32 = arith.maximumf %30, %31 : vector<8x128xf32>
    %33 = arith.truncf %32 : vector<8x128xf32> to vector<8x128xbf16>
    %c3 = arith.constant 3 : index
    %c0_22 = arith.constant 0 : index
    %c0_23 = arith.constant 0 : index
    %34 = vector.load %arg2[%c3, %c0_22, %c0_23] : memref<4x128x128xbf16, #tpu.memory_space<vmem>>, vector<1x128x128xbf16>
    %35 = vector.shape_cast %34 : vector<1x128x128xbf16> to vector<128x128xbf16>
    %cst_24 = arith.constant dense<0.000000e+00> : vector<8x128xf32>
    %36 = tpu.matmul %33, %35, %cst_24 {dimension_numbers = #tpu.dot_dimension_numbers<[1], [0], [0], [1], [0, 0, 1, 1], [], []>} : vector<8x128xbf16>, vector<128x128xbf16>, vector<8x128xf32> -> vector<8x128xf32>
    %37 = vector.extract_strided_slice %5 {offsets = [3, 0], sizes = [1, 128], strides = [1, 1]} : vector<4x128xf32> to vector<1x128xf32>
    %38 = vector.broadcast %37 : vector<1x128xf32> to vector<8x128xf32>
    %39 = arith.addf %36, %38 : vector<8x128xf32>
    %40 = vector.extract_strided_slice %39 {offsets = [0, 0], sizes = [8, 8], strides = [1, 1]} : vector<8x128xf32> to vector<8x8xf32>
    %cst_25 = arith.constant dense<0xFF800000> : vector<8xf32>
    %41 = vector.multi_reduction <maximumf>, %40, %cst_25 [1] : vector<8x8xf32> to vector<8xf32>
    %42 = vector.shape_cast %41 : vector<8xf32> to vector<8x1xf32>
    %43 = vector.broadcast %42 : vector<8x1xf32> to vector<8x8xf32>
    %44 = arith.subf %40, %43 : vector<8x8xf32>
    %45 = math.exp %44 : vector<8x8xf32>
    %cst_26 = arith.constant dense<0.000000e+00> : vector<8xf32>
    %46 = vector.multi_reduction <add>, %45, %cst_26 [1] : vector<8x8xf32> to vector<8xf32>
    %47 = vector.shape_cast %46 : vector<8xf32> to vector<8x1xf32>
    %48 = tpu.reciprocal %47 : vector<8x1xf32> -> vector<8x1xf32>
    %49 = vector.broadcast %48 : vector<8x1xf32> to vector<8x8xf32>
    %50 = arith.mulf %45, %49 : vector<8x8xf32>
    %c0_27 = arith.constant 0 : index
    %c0_28 = arith.constant 0 : index
    %51 = vector.load %arg4[%c0_27, %c0_28] : memref<8x8xf32, #tpu.memory_space<vmem>>, vector<8x8xf32>
    tpu.vector_store %arg4[%c0_27, %c0_28], %50 {strides = array<i32>} : memref<8x8xf32, #tpu.memory_space<vmem>>, vector<8x8xf32>,
    return
  }
  func.func @transform_0(%arg0: i32) -> (i32, i32) {
    %c0_i32 = arith.constant 0 : i32
    %c0_i32_0 = arith.constant 0 : i32
    return %arg0, %c0_i32 : i32, i32
  }
  func.func @transform_1(%arg0: i32) -> (i32, i32, i32) {
    %c0_i32 = arith.constant 0 : i32
    %c0_i32_0 = arith.constant 0 : i32
    %c0_i32_1 = arith.constant 0 : i32
    %c0_i32_2 = arith.constant 0 : i32
    return %c0_i32, %c0_i32_0, %c0_i32_1 : i32, i32, i32
  }
  func.func @transform_2(%arg0: i32) -> (i32, i32) {
    %c0_i32 = arith.constant 0 : i32
    %c0_i32_0 = arith.constant 0 : i32
    %c0_i32_1 = arith.constant 0 : i32
    return %c0_i32, %c0_i32_0 : i32, i32
  }
  func.func @transform_3(%arg0: i32) -> (i32, i32) {
    %c0_i32 = arith.constant 0 : i32
    %c0_i32_0 = arith.constant 0 : i32
    return %arg0, %c0_i32 : i32, i32
  }
}

</mosaic_0001>

<bundles_post_ra>
// kernel: pose_classifier_forward.1
= control target key start
LH: loop header
LB: loop body
LE: loop exit
PB: predicated region body
PF: predicated region fallthrough
CT: control target
= control target key end

     0   :  { %8 = vsyncpa [#allocation4], 0  ;;  %s864_s0 = inlined_call_operand.hbm [shape: f32[8,68], index: 0, kind: input, shape index: {}]   ;;  %s865_s1 = inlined_call_operand.hbm [shape: bf16[4,128,128], index: 1, kind: input, shape index: {}]   ;;  %s866_s2 = inlined_call_operand.hbm [shape: f32[4,128], index: 2, kind: input, shape index: {}]   ;;  %s867_s3 = inlined_call_operand.vmem [shape: f32[8,8], index: 3, kind: output, shape index: {}]  }
   0x1   :  { %9 = vsyncpa [#allocation6], 0  ;;  %s775_s12 = smov [#allocation5]  }
   0x2   :  { %s25_s13 = sshll.u32 %s775_s12, 4  ;;  %s26_s13 = int_to_ptr.vmem [resolvable:$true] %s25_s13 }
   0x3   :  { %s719_s14 = scalar_lea.vmem %s26_s13, 4096  ;;  %p724_p1 = scmp.lt.s32.totalorder %s26_s13, %s26_s13 }
   0x4   :  { %p720_p0 = scmp.ne.s32.totalorder %s26_s13, %s719_s14  ;;  %p725_p2 = scmp.lt.s32.totalorder %s719_s14, %s719_s14 }
   0x6   :  { %p726_p3 = por %p725_p2, %p724_p1 }
   0x8   :  { %p727_p4 = pnand %p726_p3, %p720_p0 }
   0xa   :  { %730 = shalt.err (!%p727_p4)
}
   0xb   :  { %s776_s15 = smov 64   ;;  %s777_s16 = smov 4  }
   0xc   :  { %31 = dma.hbm_to_vmem [thread:$0]  %s865_s1, 4096, %s26_s13, [#allocation6], %s776_s15, %s776_s15, %s777_s16  }
   0xd   :  { %s778_s19 = smov [#allocation3]   ;;  %s779_s21 = smov [#allocation7]  }
   0xe   :  { %s16_s20 = sshll.u32 %s778_s19, 4  ;;  %s38_s22 = sshll.u32 %s779_s21, 4  ;;  %s17_s20 = int_to_ptr.vmem [resolvable:$true] %s16_s20  ;;  %s39_s22 = int_to_ptr.vmem [resolvable:$true] %s38_s22 }
   0xf   :  { %s739_s23 = scalar_lea.vmem %s17_s20, 128  ;;  %p744_p6 = scmp.lt.s32.totalorder %s17_s20, %s17_s20 }
  0x10   :  { %p740_p5 = scmp.ne.s32.totalorder %s17_s20, %s739_s23  ;;  %p745_p7 = scmp.lt.s32.totalorder %s739_s23, %s739_s23 }
  0x12   :  { %p746_p8 = por %p745_p7, %p744_p6 }
  0x14   :  { %p747_p9 = pnand %p746_p8, %p740_p5 }
  0x16   :  { %750 = shalt.err (!%p747_p9)
}
  0x17   :  { %19 = dma.hbm_to_vmem [thread:$0]  %s864_s0, 128, %s17_s20, [#allocation4]  }
  0x18   :  { %s759_s26 = scalar_lea.vmem %s39_s22, 64  ;;  %p764_p11 = scmp.lt.s32.totalorder %s39_s22, %s39_s22 }
  0x19   :  { %p760_p10 = scmp.ne.s32.totalorder %s39_s22, %s759_s26  ;;  %p765_p12 = scmp.lt.s32.totalorder %s759_s26, %s759_s26 }
  0x1b   :  { %p766_p13 = por %p765_p12, %p764_p11 }
  0x1d   :  { %p767_p0 = pnand %p766_p13, %p760_p10 }
  0x1f   :  { %770 = shalt.err (!%p767_p0)
}
  0x20   :  { %41 = dma.hbm_to_vmem [thread:$0]  %s866_s2, 64, %s39_s22, [#allocation6]  }
  0x21   :  { %771 = dma.done.wait [#allocation4], 128  }
  0x22   :  { %772 = vsyncadd [#allocation4], 4294967168 }
  0x23   :  { %773 = dma.done.wait [#allocation6], 4160  }
  0x24   :  { %774 = vsyncadd [#allocation6], 4294963136  ;;  %v780_v0 = vmov 0.0   ;;  %vm781_vm0 = vmmov 0   ;;  %v782_v1 = vmov 0   ;;  %v675_v2 = vld [vmem:[#allocation5 + $0x38] sm:$0xff]   ;;  %v75_v27 = vlaneseq }
  0x25   :  { %587 = vmatprep.subr.bf16.mxu0 %v780_v0  ;;  %603 = vmatprep.mubr.msk.bf16.mxu0 %vm781_vm0, %v780_v0  ;;  %52 = vst [vmem:[#allocation2] sm:$0xf] %v782_v1  ;;  %v676_v3 = vld [vmem:[#allocation5 + $0x30] sm:$0xff]   ;;  %v677_v4 = vld [vmem:[#allocation5 + $0x28] sm:$0xff]   ;;  %v53_v5 = vld [vmem:[#allocation3] sm:$0xff]  ;;  %vm55_vm1 = vcmask 551936  }
  0x26   :  { %607 = vmatprep.subr.bf16.mxu1 %v780_v0  ;;  %623 = vmatprep.mubr.msk.bf16.mxu1 %vm781_vm0, %v780_v0  ;;  %v54_v6 = vpack.c.bf16 %v53_v5, %v53_v5  ;;  %v683_v7 = vld [vmem:[#allocation5 + $0x78] sm:$0xff]   ;;  %v678_v8 = vld [vmem:[#allocation5 + $0x20] sm:$0xff]   ;;  %v684_v9 = vld [vmem:[#allocation5 + $0x70] sm:$0xff]   ;;  %v842_v28 = vshrl.u32 %v75_v27, 7  ;;  %vm500_vm2 = vcmask 64512  }
  0x27   :  { %588 = vmatpush3.bf16.msra.mxu0 %v675_v2  ;;  %608 = vmatpush3.bf16.msra.mxu1 %v683_v7  ;;  %v679_v10 = vld [vmem:[#allocation5 + $0x18] sm:$0xff]   ;;  %v685_v11 = vld [vmem:[#allocation5 + $0x68] sm:$0xff]   ;;  %v680_v12 = vld [vmem:[#allocation5 + $0x10] sm:$0xff]  }
  0x28   :  { %589 = vmatprep.subr.bf16.mxu0 %v780_v0  ;;  %56 = vst.msk [vmem:[#allocation2] sm:$0xf] %vm55_vm1, %v54_v6  ;;  %609 = vmatprep.subr.bf16.mxu1 %v780_v0  ;;  %v686_v13 = vld [vmem:[#allocation5 + $0x60] sm:$0xff]   ;;  %v681_v14 = vld [vmem:[#allocation5 + $0x8] sm:$0xff]   ;;  %v687_v15 = vld [vmem:[#allocation5 + $0x58] sm:$0xff]   ;;  %v77_v29 = vsub.s32 0, %v842_v28 }
  0x29   :  { %v682_v16 = vld [vmem:[#allocation5] sm:$0xff]   ;;  %v688_v17 = vld [vmem:[#allocation5 + $0x50] sm:$0xff]   ;;  %v689_v19 = vld [vmem:[#allocation5 + $0x48] sm:$0xff]   ;;  %v188_v47 = vsub.s32 1, %v842_v28  ;;  %v299_v58 = vsub.s32 2, %v842_v28 }
  0x2a   :  { %v690_v20 = vld [vmem:[#allocation5 + $0x40] sm:$0xff]   ;;  %v691_v21 = vld [vmem:[#allocation5 + $0xb8] sm:$0xff]   ;;  %v692_v22 = vld [vmem:[#allocation5 + $0xb0] sm:$0xff]  }
  0x2b   :  { %590 = vmatpush3.bf16.msra.mxu0 %v676_v3  ;;  %610 = vmatpush3.bf16.msra.mxu1 %v684_v9  ;;  %v693_v23 = vld [vmem:[#allocation5 + $0xa8] sm:$0xff]   ;;  %v694_v24 = vld [vmem:[#allocation5 + $0xa0] sm:$0xff]   ;;  %v695_v25 = vld [vmem:[#allocation5 + $0x98] sm:$0xff]  }
  0x2c   :  { %591 = vmatprep.subr.bf16.mxu0 %v780_v0  ;;  %611 = vmatprep.subr.bf16.mxu1 %v780_v0  ;;  %v696_v26 = vld [vmem:[#allocation5 + $0x90] sm:$0xff]   ;;  %v57_v30 = vld [vmem:[#allocation7] sm:$0xf]  ;;  %v697_v39 = vld [vmem:[#allocation5 + $0x88] sm:$0xff]  }
  0x2d   :  { %v78_v31 = vrot.slane %v57_v30, %v77_v29  ;;  %v698_v40 = vld [vmem:[#allocation5 + $0x80] sm:$0xff]   ;;  %v699_v41 = vld [vmem:[#allocation5 + $0xf8] sm:$0xff]   ;;  %v700_v42 = vld [vmem:[#allocation5 + $0xf0] sm:$0xff]   ;;  %v189_v48 = vrot.slane %v57_v30, %v188_v47  ;;  %v300_v59 = vrot.slane %v57_v30, %v299_v58 }
  0x2e   :  { %v701_v43 = vld [vmem:[#allocation5 + $0xe8] sm:$0xff]   ;;  %v702_v44 = vld [vmem:[#allocation5 + $0xe0] sm:$0xff]   ;;  %v703_v45 = vld [vmem:[#allocation5 + $0xd8] sm:$0xff]  }
  0x2f   :  { %592 = vmatpush3.bf16.msra.mxu0 %v677_v4  ;;  %612 = vmatpush3.bf16.msra.mxu1 %v685_v11  ;;  %v58_v18 = vld [vmem:[#allocation2] sm:$0xf]  ;;  %v705_v56 = vld [vmem:[#allocation5 + $0xc8] sm:$0xff]   ;;  %v706_v57 = vld [vmem:[#allocation5 + $0xc0] sm:$0xff]   ;;  %v410_v4 = vsub.s32 3, %v842_v28 }
  0x30   :  { %593 = vmatprep.subr.bf16.mxu0 %v780_v0  ;;  %613 = vmatprep.subr.bf16.mxu1 %v780_v0  ;;  %v704_v46 = vld [vmem:[#allocation5 + $0xd0] sm:$0xff]  }
  0x31   :  { %v411_v5 = vrot.slane %v57_v30, %v410_v4 }
  0x33   :  { %594 = vmatpush3.bf16.msra.mxu0 %v678_v8  ;;  %614 = vmatpush3.bf16.msra.mxu1 %v686_v13 }
  0x34   :  { %595 = vmatprep.subr.bf16.mxu0 %v780_v0  ;;  %615 = vmatprep.subr.bf16.mxu1 %v780_v0 }
  0x37   :  { %596 = vmatpush3.bf16.msra.mxu0 %v679_v10  ;;  %616 = vmatpush3.bf16.msra.mxu1 %v687_v15 }
  0x38   :  { %597 = vmatprep.subr.bf16.mxu0 %v780_v0  ;;  %617 = vmatprep.subr.bf16.mxu1 %v780_v0 }
  0x3b   :  { %598 = vmatpush3.bf16.msra.mxu0 %v680_v12  ;;  %618 = vmatpush3.bf16.msra.mxu1 %v688_v17 }
  0x3c   :  { %599 = vmatprep.subr.bf16.mxu0 %v780_v0  ;;  %619 = vmatprep.subr.bf16.mxu1 %v780_v0 }
  0x3f   :  { %600 = vmatpush3.bf16.msra.mxu0 %v681_v14  ;;  %620 = vmatpush3.bf16.msra.mxu1 %v689_v19 }
  0x40   :  { %601 = vmatprep.subr.bf16.mxu0 %v780_v0  ;;  %621 = vmatprep.subr.bf16.mxu1 %v780_v0 }
  0x43   :  { %602 = vmatpush3.bf16.msra.mxu0 %v682_v16  ;;  %622 = vmatpush3.bf16.msra.mxu1 %v690_v20 }
  0x44   :  { %627 = vmatprep.subr.bf16.mxu0 %v780_v0  ;;  %647 = vmatprep.subr.bf16.mxu1 %v780_v0 }
  0x46   :  { %604 = vmatmul.mubr.bf16.vlgmr.msra.gmra.mxu0 %v58_v18 }
  0x47   :  { %643 = vmatprep.mubr.msk.bf16.mxu0 %vm781_vm0, %v780_v0  ;;  %628 = vmatpush3.bf16.msra.mxu0 %v691_v21 }
  0x48   :  { %629 = vmatprep.subr.bf16.mxu0 %v780_v0 }
  0x4b   :  { %630 = vmatpush3.bf16.msra.mxu0 %v692_v22 }
  0x4c   :  { %631 = vmatprep.subr.bf16.mxu0 %v780_v0 }
  0x4f   :  { %632 = vmatpush3.bf16.msra.mxu0 %v693_v23 }
  0x50   :  { %633 = vmatprep.subr.bf16.mxu0 %v780_v0 }
  0x53   :  { %634 = vmatpush3.bf16.msra.mxu0 %v694_v24 }
  0x54   :  { %635 = vmatprep.subr.bf16.mxu0 %v780_v0 }
  0x57   :  { %636 = vmatpush3.bf16.msra.mxu0 %v695_v25 }
  0x58   :  { %637 = vmatprep.subr.bf16.mxu0 %v780_v0 }
  0x5b   :  { %638 = vmatpush3.bf16.msra.mxu0 %v696_v26 }
  0x5c   :  { %639 = vmatprep.subr.bf16.mxu0 %v780_v0 }
  0x5f   :  { %640 = vmatpush3.bf16.msra.mxu0 %v697_v39 }
  0x60   :  { %641 = vmatprep.subr.bf16.mxu0 %v780_v0 }
  0x63   :  { %642 = vmatpush3.bf16.msra.mxu0 %v698_v40 }
 0x106   :  { %v161_v32 = vpop.f32.mrf.mxu0 }
 0x107   :  { %v162_v33 = vadd.f32 %v161_v32, %v78_v31 }
 0x108   :  { %v605_v34 = vpop.f32.mrf.mxu0 }
 0x109   :  { %v167_v35 = vmax.f32 %v162_v33, 0.0 }
 0x10a   :  { %v164_v36 = vpop.f32.mrf.mxu0 }
 0x10b   :  { %v168_v37 = vpack.c.bf16 %v167_v35, %v167_v35 }
 0x10c   :  { %v606_v38 = vpop.f32.mrf.mxu0 }
 0x10d   :  { %624 = vmatmul.mubr.bf16.vlgmr.msra.gmra.mxu1 %v168_v37 }
 0x10e   :  { %663 = vmatprep.mubr.msk.bf16.mxu1 %vm781_vm0, %v780_v0  ;;  %648 = vmatpush3.bf16.msra.mxu1 %v699_v41 }
 0x10f   :  { %649 = vmatprep.subr.bf16.mxu1 %v780_v0 }
 0x112   :  { %650 = vmatpush3.bf16.msra.mxu1 %v700_v42 }
 0x113   :  { %651 = vmatprep.subr.bf16.mxu1 %v780_v0 }
 0x116   :  { %652 = vmatpush3.bf16.msra.mxu1 %v701_v43 }
 0x117   :  { %653 = vmatprep.subr.bf16.mxu1 %v780_v0 }
 0x11a   :  { %654 = vmatpush3.bf16.msra.mxu1 %v702_v44 }
 0x11b   :  { %655 = vmatprep.subr.bf16.mxu1 %v780_v0 }
 0x11e   :  { %656 = vmatpush3.bf16.msra.mxu1 %v703_v45 }
 0x11f   :  { %657 = vmatprep.subr.bf16.mxu1 %v780_v0 }
 0x122   :  { %658 = vmatpush3.bf16.msra.mxu1 %v704_v46 }
 0x123   :  { %659 = vmatprep.subr.bf16.mxu1 %v780_v0 }
 0x126   :  { %660 = vmatpush3.bf16.msra.mxu1 %v705_v56 }
 0x127   :  { %661 = vmatprep.subr.bf16.mxu1 %v780_v0 }
 0x12a   :  { %662 = vmatpush3.bf16.msra.mxu1 %v706_v57 }
 0x1cd   :  { %v272_v49 = vpop.f32.mrf.mxu1 }
 0x1ce   :  { %v273_v50 = vadd.f32 %v272_v49, %v189_v48 }
 0x1cf   :  { %v625_v51 = vpop.f32.mrf.mxu1 }
 0x1d0   :  { %v278_v52 = vmax.f32 %v273_v50, 0.0 }
 0x1d1   :  { %v275_v53 = vpop.f32.mrf.mxu1 }
 0x1d2   :  { %v279_v54 = vpack.c.bf16 %v278_v52, %v278_v52 }
 0x1d3   :  { %v626_v55 = vpop.f32.mrf.mxu1 }
 0x1d4   :  { %644 = vmatmul.mubr.bf16.vlgmr.msra.gmra.mxu0 %v279_v54 }
 0x294   :  { %v383_v60 = vpop.f32.mrf.mxu0 }
 0x295   :  { %v384_v61 = vadd.f32 %v383_v60, %v300_v59 }
 0x296   :  { %v645_v62 = vpop.f32.mrf.mxu0 }
 0x297   :  { %v389_v63 = vmax.f32 %v384_v61, 0.0 }
 0x298   :  { %v386_v1 = vpop.f32.mrf.mxu0 }
 0x299   :  { %v390_v2 = vpack.c.bf16 %v389_v63, %v389_v63 }
 0x29a   :  { %v646_v3 = vpop.f32.mrf.mxu0 }
 0x29b   :  { %664 = vmatmul.mubr.bf16.vlgmr.msra.gmra.mxu1 %v390_v2 }
 0x35b   :  { %v494_v6 = vpop.f32.mrf.mxu1 }
 0x35c   :  { %v495_v7 = vadd.f32 %v494_v6, %v411_v5 }
 0x35d   :  { %v665_v0 = vpop.f32.mrf.mxu1 }
 0x35e   :  { %v501_v8 = vsel %vm500_vm2, %v495_v7, -inf }
 0x35f   :  { %502 = vmax.xlane.f32.xlu0 %v501_v8  ;;  %v497_v9 = vpop.f32.mrf.mxu1 }
 0x361   :  { %v666_v10 = vpop.f32.mrf.mxu1 }
 0x3e8   :  { %v503_v11 = vpop.xlane.xlu0 %502 }
 0x3e9   :  { %v504_v12 = vsub.f32 %v495_v7, %v503_v11 }
 0x3eb   :  { %v505_v13 = vmul.f32 1.442695, %v504_v12 }
 0x3ed   :  { %707 = vpow2.f32 %v505_v13 }
 0x3fa   :  { %v708_v14 = vpop.eup %707 }
 0x3fb   :  { %v507_v15 = vsel %vm500_vm2, %v708_v14, 0.0 }
 0x3fc   :  { %508 = vadd.xlane.f32.xlu0 %v507_v15 }
 0x485   :  { %v509_v16 = vpop.xlane.xlu0 %508 }
 0x486   :  { %709 = vrcp.f32 %v509_v16 }
 0x493   :  { %v710_v17 = vpop.eup %709 }
 0x494   :  { %v511_v18 = vmul.f32 %v710_v17, %v708_v14 }
 0x496   :  { %512 = vst.msk [vmem:[%s867_s3] sm:$0xff] %vm500_vm2, %v511_v18 }
 0x497   :  { %517 = vsyncpa [#allocation4], 1 }
 0x498   :  { %518 = vsyncpa [#allocation6], 1 }

</bundles_post_ra>
